<compile_context>
chip_gen: v6e
topology: v6e:2x2x1
jax: 0.10.0
libtpu: 0.0.40
codegen_flags: <defaults>
</compile_context>

<pallas_src>
import functools

import jax
import jax.numpy as jnp
from jax.experimental import pallas as pl
from jax.experimental.pallas import tpu as pltpu

EPS = 1e-5  # nn.BatchNorm1d default eps


def _round_up(v, m):
    return -(-v // m) * m


def conv1d_bn_relu_kernel(w_ref, p_ref, g_ref, b_ref, o_ref, sum_ref, ssq_ref,
                          *, m_true):
    """Fused conv-as-matmul + two-phase BN (training stats) + ReLU.

    Grid = (C_out tiles, phase in {0: stats, 1: apply}, M tiles).

    w_ref:   (TILE_C, CK_pad)   conv weight tile (compute dtype, zero padded)
    p_ref:   (CK_pad, TILE_M)   im2col patch tile (compute dtype, zero padded)
    g_ref:   (TILE_C, 1)        gamma tile (f32)
    b_ref:   (TILE_C, 1)        beta tile (f32)
    o_ref:   (TILE_C, TILE_M)   output tile (f32)
    sum_ref: (TILE_C, 1)        f32 scratch; phase 0: sum,   after finalize: scale
    ssq_ref: (TILE_C, 1)        f32 scratch; phase 0: sumsq, after finalize: shift
    m_true:  static int, true number of (N * L_out) columns for BN statistics.
    """
    phase = pl.program_id(1)
    m_idx = pl.program_id(2)
    last_m = pl.num_programs(2) - 1

    # Conv1d tile as a dense MXU matmul, f32 accumulation regardless of operand
    # dtype. Recomputed in both phases (cheap for small CK). Padded rows/cols
    # are zero, so the result is exact on the valid region and zero elsewhere.
    conv = jnp.dot(w_ref[...], p_ref[...], preferred_element_type=jnp.float32)

    @pl.when(jnp.logical_and(phase == 0, m_idx == 0))
    def _init_stats():
        sum_ref[...] = jnp.zeros_like(sum_ref)
        ssq_ref[...] = jnp.zeros_like(ssq_ref)

    @pl.when(phase == 0)
    def _accumulate():
        # Padded columns contribute exactly zero to both sums.
        sum_ref[...] += jnp.sum(conv, axis=-1, keepdims=True)
        ssq_ref[...] += jnp.sum(conv * conv, axis=-1, keepdims=True)

    @pl.when(jnp.logical_and(phase == 0, m_idx == last_m))
    def _finalize_stats():
        inv_m = jnp.float32(1.0 / m_true)
        mean = sum_ref[...] * inv_m
        # Single-pass variance; clamp at 0 to guard against f32 cancellation.
        var = jnp.maximum(ssq_ref[...] * inv_m - mean * mean, 0.0)
        inv_std = jax.lax.rsqrt(var + jnp.float32(EPS))
        scale = inv_std * g_ref[...]
        shift = b_ref[...] - mean * scale
        # Reuse the stats scratch to carry (scale, shift) into phase 1.
        sum_ref[...] = scale
        ssq_ref[...] = shift

    @pl.when(phase == 1)
    def _apply():
        y = conv * sum_ref[...] + ssq_ref[...]
        o_ref[...] = jnp.maximum(y, 0.0).astype(o_ref.dtype)


def conv1d_bn_relu(x, w, gamma, beta, *, compute_dtype=jnp.float32,
                   tile_m_target=2048):
    """x: (N, C_in, L) f32; w: (C_out, C_in, K) f32; gamma/beta: (C_out,) f32.

    Returns (N, C_out, L_out) f32 with L_out = L - K + 1, matching
    Conv1d(bias=False) -> BatchNorm1d(training mode) -> ReLU.
    """
    N, C_in, L = x.shape
    C_out, _, K = w.shape
    L_out = L - K + 1
    M = N * L_out
    CK = C_in * K

    compute_dtype = jnp.dtype(compute_dtype)
    sub = 16 if compute_dtype == jnp.dtype(jnp.bfloat16) else 8

    # ---- im2col in the wrapper (layout plumbing) -----------------------------
    # patches[c*K + j, n*L_out + l] = x[n, c, l + j]
    cols = jnp.stack([x[:, :, j:j + L_out] for j in range(K)], axis=2)  # (N,C_in,K,L_out)
    patches = cols.transpose(1, 2, 0, 3).reshape(CK, M)
    w2d = w.reshape(C_out, CK)                                          # matching row order

    # ---- tile sizes, per-generation friendly ---------------------------------
    CK_pad = _round_up(CK, sub)
    if _round_up(C_out, sub) > 128:
        TILE_C = 128
        C_out_pad = _round_up(C_out, TILE_C)
    else:
        TILE_C = _round_up(C_out, sub)
        C_out_pad = TILE_C
    M_pad128 = _round_up(M, 128)
    TILE_M = min(int(tile_m_target), M_pad128)       # multiple of 128
    M_pad = _round_up(M, TILE_M)

    # ---- pad (zero padding is exact for a bias-free conv) and cast ----------
    # TODO(synk): at production sizes the zero-pad of patches is an extra full
    # HBM copy; fold the partial last tile into the grid instead.
    patches = jnp.pad(patches, ((0, CK_pad - CK), (0, M_pad - M))).astype(compute_dtype)
    w2d = jnp.pad(w2d, ((0, C_out_pad - C_out), (0, CK_pad - CK))).astype(compute_dtype)
    gamma_p = jnp.pad(gamma.astype(jnp.float32).reshape(C_out, 1),
                      ((0, C_out_pad - C_out), (0, 0)))
    beta_p = jnp.pad(beta.astype(jnp.float32).reshape(C_out, 1),
                     ((0, C_out_pad - C_out), (0, 0)))

    # ---- scoped-VMEM budget from the per-tile footprint ----------------------
    itemsize = compute_dtype.itemsize
    tile_bytes = (
        2 * (TILE_C * CK_pad * itemsize)      # weight tile, double buffered
        + 2 * (CK_pad * TILE_M * itemsize)    # patch tile, double buffered
        + 2 * (TILE_C * TILE_M * 4)           # output tile, double buffered
        + 4 * (TILE_C * 4)                    # gamma/beta tiles
        + 2 * (TILE_C * 4)                    # stats scratch
        + 2 * (TILE_C * TILE_M * 4)           # conv temporary / vreg headroom
    )
    vmem_limit = int(min(48 * 2**20, max(16 * 2**20, 2 * tile_bytes)))

    grid = (C_out_pad // TILE_C, 2, M_pad // TILE_M)

    out2d = pl.pallas_call(
        functools.partial(conv1d_bn_relu_kernel, m_true=M),
        out_shape=jax.ShapeDtypeStruct((C_out_pad, M_pad), jnp.float32),
        grid_spec=pltpu.PrefetchScalarGridSpec(
            num_scalar_prefetch=0,
            grid=grid,
            in_specs=[
                pl.BlockSpec((TILE_C, CK_pad), lambda c, p, m: (c, 0)),
                pl.BlockSpec((CK_pad, TILE_M), lambda c, p, m: (0, m)),
                pl.BlockSpec((TILE_C, 1), lambda c, p, m: (c, 0)),
                pl.BlockSpec((TILE_C, 1), lambda c, p, m: (c, 0)),
            ],
            # phase 0 never writes: pin its block index to (c, 0) so no garbage
            # writebacks happen; phase 1 writes each (c, m) block exactly once.
            out_specs=pl.BlockSpec((TILE_C, TILE_M), lambda c, p, m: (c, m * p)),
            scratch_shapes=[pltpu.VMEM((TILE_C, 1), jnp.float32),
                            pltpu.VMEM((TILE_C, 1), jnp.float32)],
        ),
        compiler_params=pltpu.CompilerParams(
            dimension_semantics=("parallel", "arbitrary", "arbitrary"),
            vmem_limit_bytes=vmem_limit,
        ),
    )(w2d, patches, gamma_p, beta_p)

    # Strip padding and restore the PyTorch (N, C_out, L_out) layout.
    out2d = out2d[:C_out, :M]
    return out2d.reshape(C_out, N, L_out).transpose(1, 0, 2)


def reference_forward(x, w, gamma, beta):
    """Pure-JAX reference mirroring the PyTorch module (training-mode BN)."""
    conv = jax.lax.conv_general_dilated(
        x, w, window_strides=(1,), padding="VALID",
        dimension_numbers=("NCH", "OIH", "NCH"))
    mean = conv.mean(axis=(0, 2), keepdims=True)
    var = ((conv - mean) ** 2).mean(axis=(0, 2), keepdims=True)
    y = (conv - mean) / jnp.sqrt(var + EPS)
    y = y * gamma[None, :, None] + beta[None, :, None]
    return jnp.maximum(y, 0.0)


if __name__ == "__main__":
    # Small shapes consistent with Conv1DBNReLU(in_channel=4, out_channel=8, k_size=3)
    N, C_IN, C_OUT, L, K = 2, 4, 8, 16, 3

    key = jax.random.PRNGKey(0)
    kx, kw, kg, kb = jax.random.split(key, 4)

    x = jax.random.normal(kx, (N, C_IN, L), dtype=jnp.float32)
    # Deterministic synthetic parameters (shapes from the module's __init__).
    w = 0.1 * jax.random.normal(kw, (C_OUT, C_IN, K), dtype=jnp.float32)
    gamma = 1.0 + 0.1 * jax.random.normal(kg, (C_OUT,), dtype=jnp.float32)
    beta = 0.05 * jax.random.normal(kb, (C_OUT,), dtype=jnp.float32)

    ref = reference_forward(x, w, gamma, beta)

    # Full-precision path: exact parity with the f32 reference.
    out = conv1d_bn_relu(x, w, gamma, beta, compute_dtype=jnp.float32)
    out = jax.block_until_ready(out)
    assert out.shape == (N, C_OUT, L - K + 1)
    assert jnp.allclose(out, ref, atol=1e-4, rtol=1e-4), "f32 mismatch vs reference"

    # bf16-operand path (f32 accumulation + f32 BN stats): coarse tolerance.
    out_bf16 = conv1d_bn_relu(x, w, gamma, beta, compute_dtype=jnp.bfloat16)
    out_bf16 = jax.block_until_ready(out_bf16)
    assert jnp.allclose(out_bf16, ref, atol=6e-2, rtol=6e-2), "bf16 mismatch vs reference"

    print("KERNEL_OK")
</pallas_src>

<mosaic_0001>
module attributes {stable_mosaic.version = 11 : i64} {
  func.func @conv1d_bn_relu_kernel(%arg0: i32, %arg1: i32, %arg2: i32, %arg3: memref<8x16xf32, #tpu.memory_space<vmem>>, %arg4: memref<16x128xf32, #tpu.memory_space<vmem>>, %arg5: memref<8x1xf32, #tpu.memory_space<vmem>>, %arg6: memref<8x1xf32, #tpu.memory_space<vmem>>, %arg7: memref<8x128xf32, #tpu.memory_space<vmem>>, %arg8: memref<8x1xf32, #tpu.memory_space<vmem>>, %arg9: memref<8x1xf32, #tpu.memory_space<vmem>>) attributes {dimension_semantics = [#tpu.dimension_semantics<parallel>, #tpu.dimension_semantics<arbitrary>, #tpu.dimension_semantics<arbitrary>], iteration_bounds = array<i64: 1, 2, 1>, scalar_prefetch = 0 : i64, scratch_operands = 2 : i64, tpu.core_type = #tpu.core_type<tc>, window_params = [{transform_indices = @transform_0, window_bounds = array<i64: 8, 16>}, {transform_indices = @transform_1, window_bounds = array<i64: 16, 128>}, {transform_indices = @transform_2, window_bounds = array<i64: 8, 1>}, {transform_indices = @transform_3, window_bounds = array<i64: 8, 1>}, {transform_indices = @transform_4, window_bounds = array<i64: 8, 128>}]} {
    %c0 = arith.constant 0 : index
    %c0_0 = arith.constant 0 : index
    %0 = vector.load %arg3[%c0, %c0_0] : memref<8x16xf32, #tpu.memory_space<vmem>>, vector<8x16xf32>
    %c0_1 = arith.constant 0 : index
    %c0_2 = arith.constant 0 : index
    %1 = vector.load %arg4[%c0_1, %c0_2] : memref<16x128xf32, #tpu.memory_space<vmem>>, vector<16x128xf32>
    %cst = arith.constant dense<0.000000e+00> : vector<8x128xf32>
    %2 = tpu.matmul %0, %1, %cst {dimension_numbers = #tpu.dot_dimension_numbers<[1], [0], [0], [1], [0, 0, 1, 1], [], []>} : vector<8x16xf32>, vector<16x128xf32>, vector<8x128xf32> -> vector<8x128xf32>
    %c0_i32 = arith.constant 0 : i32
    %3 = arith.cmpi eq, %arg1, %c0_i32 : i32
    %c0_i32_3 = arith.constant 0 : i32
    %4 = arith.cmpi eq, %arg2, %c0_i32_3 : i32
    %5 = arith.andi %3, %4 : i1
    %6 = arith.extui %5 : i1 to i32
    %c0_i32_4 = arith.constant 0 : i32
    %7 = arith.cmpi ne, %6, %c0_i32_4 : i32
    scf.if %7 {
      %cst_11 = arith.constant 0.000000e+00 : f32
      %19 = vector.broadcast %cst_11 : f32 to vector<8x1xf32>
      %c0_12 = arith.constant 0 : index
      %c0_13 = arith.constant 0 : index
      %20 = vector.load %arg8[%c0_12, %c0_13] : memref<8x1xf32, #tpu.memory_space<vmem>>, vector<8x1xf32>
      tpu.vector_store %arg8[%c0_12, %c0_13], %19 {strides = array<i32>} : memref<8x1xf32, #tpu.memory_space<vmem>>, vector<8x1xf32>,
      %cst_14 = arith.constant 0.000000e+00 : f32
      %21 = vector.broadcast %cst_14 : f32 to vector<8x1xf32>
      %c0_15 = arith.constant 0 : index
      %c0_16 = arith.constant 0 : index
      %22 = vector.load %arg9[%c0_15, %c0_16] : memref<8x1xf32, #tpu.memory_space<vmem>>, vector<8x1xf32>
      tpu.vector_store %arg9[%c0_15, %c0_16], %21 {strides = array<i32>} : memref<8x1xf32, #tpu.memory_space<vmem>>, vector<8x1xf32>,
    } else {
    }
    %c0_i32_5 = arith.constant 0 : i32
    %8 = arith.cmpi eq, %arg1, %c0_i32_5 : i32
    %9 = arith.extui %8 : i1 to i32
    %c0_i32_6 = arith.constant 0 : i32
    %10 = arith.cmpi ne, %9, %c0_i32_6 : i32
    scf.if %10 {
      %c0_11 = arith.constant 0 : index
      %c0_12 = arith.constant 0 : index
      %19 = vector.load %arg8[%c0_11, %c0_12] : memref<8x1xf32, #tpu.memory_space<vmem>>, vector<8x1xf32>
      %cst_13 = arith.constant dense<0.000000e+00> : vector<8xf32>
      %20 = vector.multi_reduction <add>, %2, %cst_13 [1] : vector<8x128xf32> to vector<8xf32>
      %21 = vector.shape_cast %20 : vector<8xf32> to vector<8x1xf32>
      %22 = arith.addf %19, %21 : vector<8x1xf32>
      %c0_14 = arith.constant 0 : index
      %c0_15 = arith.constant 0 : index
      %23 = vector.load %arg8[%c0_14, %c0_15] : memref<8x1xf32, #tpu.memory_space<vmem>>, vector<8x1xf32>
      tpu.vector_store %arg8[%c0_14, %c0_15], %22 {strides = array<i32>} : memref<8x1xf32, #tpu.memory_space<vmem>>, vector<8x1xf32>,
      %c0_16 = arith.constant 0 : index
      %c0_17 = arith.constant 0 : index
      %24 = vector.load %arg9[%c0_16, %c0_17] : memref<8x1xf32, #tpu.memory_space<vmem>>, vector<8x1xf32>
      %25 = arith.mulf %2, %2 : vector<8x128xf32>
      %cst_18 = arith.constant dense<0.000000e+00> : vector<8xf32>
      %26 = vector.multi_reduction <add>, %25, %cst_18 [1] : vector<8x128xf32> to vector<8xf32>
      %27 = vector.shape_cast %26 : vector<8xf32> to vector<8x1xf32>
      %28 = arith.addf %24, %27 : vector<8x1xf32>
      %c0_19 = arith.constant 0 : index
      %c0_20 = arith.constant 0 : index
      %29 = vector.load %arg9[%c0_19, %c0_20] : memref<8x1xf32, #tpu.memory_space<vmem>>, vector<8x1xf32>
      tpu.vector_store %arg9[%c0_19, %c0_20], %28 {strides = array<i32>} : memref<8x1xf32, #tpu.memory_space<vmem>>, vector<8x1xf32>,
    } else {
    }
    %c0_i32_7 = arith.constant 0 : i32
    %11 = arith.cmpi eq, %arg1, %c0_i32_7 : i32
    %c0_i32_8 = arith.constant 0 : i32
    %12 = arith.cmpi eq, %arg2, %c0_i32_8 : i32
    %13 = arith.andi %11, %12 : i1
    %14 = arith.extui %13 : i1 to i32
    %c0_i32_9 = arith.constant 0 : i32
    %15 = arith.cmpi ne, %14, %c0_i32_9 : i32
    scf.if %15 {
      %c0_11 = arith.constant 0 : index
      %c0_12 = arith.constant 0 : index
      %19 = vector.load %arg8[%c0_11, %c0_12] : memref<8x1xf32, #tpu.memory_space<vmem>>, vector<8x1xf32>
      %cst_13 = arith.constant 0.0357142873 : f32
      %20 = vector.broadcast %cst_13 : f32 to vector<8x1xf32>
      %21 = arith.mulf %19, %20 : vector<8x1xf32>
      %c0_14 = arith.constant 0 : index
      %c0_15 = arith.constant 0 : index
      %22 = vector.load %arg9[%c0_14, %c0_15] : memref<8x1xf32, #tpu.memory_space<vmem>>, vector<8x1xf32>
      %cst_16 = arith.constant 0.0357142873 : f32
      %23 = vector.broadcast %cst_16 : f32 to vector<8x1xf32>
      %24 = arith.mulf %22, %23 : vector<8x1xf32>
      %25 = arith.mulf %21, %21 : vector<8x1xf32>
      %26 = arith.subf %24, %25 : vector<8x1xf32>
      %cst_17 = arith.constant 0.000000e+00 : f32
      %27 = vector.broadcast %cst_17 : f32 to vector<8x1xf32>
      %28 = arith.maximumf %26, %27 : vector<8x1xf32>
      %cst_18 = arith.constant 9.99999974E-6 : f32
      %29 = vector.broadcast %cst_18 : f32 to vector<8x1xf32>
      %30 = arith.addf %28, %29 : vector<8x1xf32>
      %31 = math.rsqrt %30 : vector<8x1xf32>
      %c0_19 = arith.constant 0 : index
      %c0_20 = arith.constant 0 : index
      %32 = vector.load %arg5[%c0_19, %c0_20] : memref<8x1xf32, #tpu.memory_space<vmem>>, vector<8x1xf32>
      %33 = arith.mulf %31, %32 : vector<8x1xf32>
      %c0_21 = arith.constant 0 : index
      %c0_22 = arith.constant 0 : index
      %34 = vector.load %arg6[%c0_21, %c0_22] : memref<8x1xf32, #tpu.memory_space<vmem>>, vector<8x1xf32>
      %35 = arith.mulf %21, %33 : vector<8x1xf32>
      %36 = arith.subf %34, %35 : vector<8x1xf32>
      %c0_23 = arith.constant 0 : index
      %c0_24 = arith.constant 0 : index
      %37 = vector.load %arg8[%c0_23, %c0_24] : memref<8x1xf32, #tpu.memory_space<vmem>>, vector<8x1xf32>
      tpu.vector_store %arg8[%c0_23, %c0_24], %33 {strides = array<i32>} : memref<8x1xf32, #tpu.memory_space<vmem>>, vector<8x1xf32>,
      %c0_25 = arith.constant 0 : index
      %c0_26 = arith.constant 0 : index
      %38 = vector.load %arg9[%c0_25, %c0_26] : memref<8x1xf32, #tpu.memory_space<vmem>>, vector<8x1xf32>
      tpu.vector_store %arg9[%c0_25, %c0_26], %36 {strides = array<i32>} : memref<8x1xf32, #tpu.memory_space<vmem>>, vector<8x1xf32>,
    } else {
    }
    %c1_i32 = arith.constant 1 : i32
    %16 = arith.cmpi eq, %arg1, %c1_i32 : i32
    %17 = arith.extui %16 : i1 to i32
    %c0_i32_10 = arith.constant 0 : i32
    %18 = arith.cmpi ne, %17, %c0_i32_10 : i32
    scf.if %18 {
      %c0_11 = arith.constant 0 : index
      %c0_12 = arith.constant 0 : index
      %19 = vector.load %arg8[%c0_11, %c0_12] : memref<8x1xf32, #tpu.memory_space<vmem>>, vector<8x1xf32>
      %20 = vector.broadcast %19 : vector<8x1xf32> to vector<8x128xf32>
      %21 = arith.mulf %2, %20 : vector<8x128xf32>
      %c0_13 = arith.constant 0 : index
      %c0_14 = arith.constant 0 : index
      %22 = vector.load %arg9[%c0_13, %c0_14] : memref<8x1xf32, #tpu.memory_space<vmem>>, vector<8x1xf32>
      %23 = vector.broadcast %22 : vector<8x1xf32> to vector<8x128xf32>
      %24 = arith.addf %21, %23 : vector<8x128xf32>
      %cst_15 = arith.constant 0.000000e+00 : f32
      %25 = vector.broadcast %cst_15 : f32 to vector<8x128xf32>
      %26 = arith.maximumf %24, %25 : vector<8x128xf32>
      %c0_16 = arith.constant 0 : index
      %c0_17 = arith.constant 0 : index
      %27 = vector.load %arg7[%c0_16, %c0_17] : memref<8x128xf32, #tpu.memory_space<vmem>>, vector<8x128xf32>
      tpu.vector_store %arg7[%c0_16, %c0_17], %26 {strides = array<i32>} : memref<8x128xf32, #tpu.memory_space<vmem>>, vector<8x128xf32>,
    } else {
    }
    return
  }
  func.func @transform_0(%arg0: i32, %arg1: i32, %arg2: i32) -> (i32, i32) {
    %c0_i32 = arith.constant 0 : i32
    %c0_i32_0 = arith.constant 0 : i32
    return %arg0, %c0_i32 : i32, i32
  }
  func.func @transform_1(%arg0: i32, %arg1: i32, %arg2: i32) -> (i32, i32) {
    %c0_i32 = arith.constant 0 : i32
    %c0_i32_0 = arith.constant 0 : i32
    return %c0_i32, %arg2 : i32, i32
  }
  func.func @transform_2(%arg0: i32, %arg1: i32, %arg2: i32) -> (i32, i32) {
    %c0_i32 = arith.constant 0 : i32
    %c0_i32_0 = arith.constant 0 : i32
    return %arg0, %c0_i32 : i32, i32
  }
  func.func @transform_3(%arg0: i32, %arg1: i32, %arg2: i32) -> (i32, i32) {
    %c0_i32 = arith.constant 0 : i32
    %c0_i32_0 = arith.constant 0 : i32
    return %arg0, %c0_i32 : i32, i32
  }
  func.func @transform_4(%arg0: i32, %arg1: i32, %arg2: i32) -> (i32, i32) {
    %0 = arith.muli %arg2, %arg1 : i32
    %c0_i32 = arith.constant 0 : i32
    return %arg0, %0 : i32, i32
  }
}

</mosaic_0001>

<bundles_post_ra>
// kernel: tpu_custom_call.1
= control target key start
LH: loop header
LB: loop body
LE: loop exit
PB: predicated region body
PF: predicated region fallthrough
CT: control target
= control target key end

     0   :  { %9 = vsyncpa [#allocation5], 0  ;;  %s829_s0 = inlined_call_operand.hbm [shape: f32[8,16], index: 0, kind: input, shape index: {}]   ;;  %s830_s1 = inlined_call_operand.vmem [shape: f32[16,128], index: 1, kind: input, shape index: {}]   ;;  %s831_s2 = inlined_call_operand.vmem [shape: f32[8,1], index: 2, kind: input, shape index: {}]   ;;  %s832_s3 = inlined_call_operand.vmem [shape: f32[8,1], index: 3, kind: input, shape index: {}]   ;;  %s833_s4 = inlined_call_operand.hbm [shape: f32[8,128], index: 4, kind: output, shape index: {}]  }
   0x1   :  { %10 = vsyncpa [#allocation6], 0 }
   0x2   :  { %12 = vsyncpa [#allocation6 + $0x1], 0  ;;  %s740_s15 = smov 0   ;;  %s742_s16 = smov 0  }
   0x3   :  { %s744_s17 = smov 0  }
   0x4 LB: > { %s545_s18 = sadd.s32 4294967295, %s707_s17   ;;  %s546_s19 = sadd.s32 4294967294, %s707_s17   ;;  %s707_s17 = sphi %s744_s17, %s18_s17   ;;  %s703_s16 = sphi %s742_s16, %s838_s16   ;;  %s699_s15 = sphi %s740_s15, %s837_s15  }
   0x5   : > { %s33_s20 = sadd.s32 1, %s703_s16  ;;  %p547_p0 = scmp.ge.s32.totalorder %s707_s17, 1 }
   0x6   : > { %p35_p1 = scmp.ge.s32.totalorder %s33_s20, 2  ;;  %p176_p2 = scmp.lt.s32.totalorder %s707_s17, 3 }
   0x7   : > { %p762_p3 = scmp.eq.s32.totalorder %s545_s18, 0  ;;  %s709_s23 = smov [#allocation4]  }
   0x8   : > { %s840_s20 = smov (%p35_p1, %s33_s20), 0  ;;  %p768_p4 = pnand %p547_p0, %p176_p2 }
   0x9   : > { %s191_s24 = sshll.u32 %s709_s23, 4  ;;  %s192_s24 = int_to_ptr.vmem [resolvable:$true] %s191_s24 }
   0xa   : > { %p581_p5 = pneg %p768_p4  ;;  %s638_s25 = scalar_lea.vmem %s192_s24, 128 }
   0xb   : > { %p639_p8 = scmp.ne.s32.totalorder %s192_s24, %s638_s25  ;;  %p646_p11 = scmp.lt.s32.totalorder %s192_s24, %s192_s24 }
   0xc   : > { %p582_p6 = pnand %p762_p3, %p581_p5  ;;  %p647_p12 = scmp.lt.s32.totalorder %s638_s25, %s638_s25 }
   0xe   : > { %p629_p7 = pneg %p582_p6  ;;  %p648_p13 = por %p647_p12, %p646_p11 }
  0x10   : > { %p641_p9 = pnand %p639_p8, %p629_p7 }
  0x12   : > { %p642_p10 = pneg %p641_p9 }
  0x14   : > { %p649_p0 = pnand %p648_p13, %p642_p10 }
  0x16   : > { %652 = shalt.err (!%p649_p0)
}
  0x17   : > { %584 = dma.hbm_to_vmem [thread:$0]  (!%p582_p6), %s829_s0, 128, %s192_s24, [#allocation5]  }
  0x18   : > { %225 = sbr.rel (%p768_p4) target bundleno = 573 (0x23d), region = 36 }
  0x1d   : > { %690 = dma.done.wait (%p762_p3), [#allocation5], 128  }
  0x1e   : > { %692 = vsyncadd (%p762_p3), [#allocation5], 4294967168  ;;  %v710_v0 = vmov 0.0   ;;  %vm711_vm0 = vmmov 0   ;;  %v273_v1 = vld [vmem:[%s830_s1 + $0x8] sm:$0xff]  ;;  %v272_v2 = vld [vmem:[%s830_s1] sm:$0xff] }
  0x1f   : > { %566 = vmatprep.subr.mxu0 %v710_v0  ;;  %570 = vmatprep.mubr.msk.f32.mxu0 %vm711_vm0, %v710_v0  ;;  %v271_v3 = vld [vmem:[#allocation4] sm:$0xff]  ;;  %vm274_vm1 = vcmask 130048   ;;  %p348_p1 = scmp.eq.s32.totalorder %s699_s15, 0 }
  0x20   : > { %567 = vmatpush3.msra.mxu0 %v273_v1  ;;  %vm354_vm2 = vcmask (%p348_p1), 7168   ;;  %v712_v6 = vmov (%p348_p1), 0.0  }
  0x21   : > { %568 = vmatprep.subr.mxu0 %v710_v0  ;;  %355 = vst.msk [vmem:[#allocation2] sm:$0xff] (%p348_p1), %vm354_vm2, %v712_v6  ;;  %356 = vst.msk [vmem:[#allocation3] sm:$0xff] (%p348_p1), %vm354_vm2, %v712_v6 }
  0x22   : > { %569 = vmatpush3.msra.mxu0 %v272_v2 }
  0x23   : > { %571 = vmatmul.mubr.msk.f32.vlgmr.msra.gmra.mxu0 %vm274_vm1, %v271_v3 }
  0xe1   : > { %353 = sbr.rel (!%p348_p1) target bundleno = 230 (0xe6), region = 44 }
  0xe3   : > { %v344_v4 = vpop.f32.mrf.mxu0 }
  0xe5   : > { %v572_v5 = vpop.f32.mrf.mxu0 }
  0xe6 PF: > { %p556_p2 = scmp.ne.s32.totalorder %s699_s15, 0 }
  0xe8   : > { %359 = sbr.rel (%p556_p2) target bundleno = 382 (0x17e), region = 48 }
  0xed   : > { %361 = vadd.xlane.f32.xlu0 %v344_v4  ;;  %v367_v7 = vmul.f32 %v344_v4, %v344_v4  ;;  %v360_v8 = vld [vmem:[#allocation2] sm:$0xff]  ;;  %vm364_vm3 = vcmask 7168   ;;  %v366_v11 = vld [vmem:[#allocation3] sm:$0xff] }
  0xf1   : > { %368 = vadd.xlane.f32.xlu0 %v367_v7 }
 0x176   : > { %v362_v9 = vpop.xlane.xlu0 %361 }
 0x177   : > { %v363_v10 = vadd.f32 %v362_v9, %v360_v8 }
 0x179   : > { %365 = vst.msk [vmem:[#allocation2] sm:$0xff] %vm364_vm3, %v363_v10 }
 0x17a   : > { %v369_v12 = vpop.xlane.xlu0 %368 }
 0x17b   : > { %v370_v13 = vadd.f32 %v369_v12, %v366_v11 }
 0x17d   : > { %371 = vst.msk [vmem:[#allocation3] sm:$0xff] %vm364_vm3, %v370_v13 }
 0x17e PF: > { %373 = sbr.rel (!%p348_p1) target bundleno = 418 (0x1a2), region = 52  ;;  %v383_v22 = vld [vmem:[%s831_s2] sm:$0xff] (%p348_p1)  ;;  %vm388_vm4 = vcmask (%p348_p1), 7168  }
 0x17f   : > { %v385_v25 = vld [vmem:[%s832_s3] sm:$0xff] (%p348_p1) }
 0x180   : > { %v374_v14 = vld [vmem:[#allocation2] sm:$0xff] (%p348_p1) }
 0x181   : > { %v375_v16 = vmul.f32 (%p348_p1), 0.035714287, %v374_v14 }
 0x183   : > { %v378_v18 = vmul.f32 %v375_v16, %v375_v16 }
 0x184   : > { %v376_v15 = vld [vmem:[#allocation3] sm:$0xff] }
 0x185   : > { %v377_v17 = vmul.f32 0.035714287, %v376_v15 }
 0x187   : > { %v379_v19 = vsub.f32 %v377_v17, %v378_v18 }
 0x189   : > { %v380_v20 = vmax.f32 %v379_v19, 0.0 }
 0x18b   : > { %v381_v21 = vadd.f32 1e-05, %v380_v20 }
 0x18d   : > { %624 = vrsqrt.f32 %v381_v21 }
 0x19a   : > { %v625_v23 = vpop.eup %624 }
 0x19b   : > { %v384_v24 = vmul.f32 %v625_v23, %v383_v22 }
 0x19d   : > { %v386_v26 = vmul.f32 %v384_v24, %v375_v16  ;;  %389 = vst.msk [vmem:[#allocation2] sm:$0xff] %vm388_vm4, %v384_v24 }
 0x19f   : > { %v387_v27 = vsub.f32 %v385_v25, %v386_v26 }
 0x1a1   : > { %390 = vst.msk [vmem:[#allocation3] sm:$0xff] %vm388_vm4, %v387_v27 }
 0x1a2 PF: > { %p557_p3 = scmp.ne.s32.totalorder %s699_s15, 1 }
 0x1a4   : > { %394 = sbr.rel (%p557_p3) target bundleno = 560 (0x230), region = 56 }
 0x1a9   : > { %v395_v28 = vld [vmem:[#allocation2] sm:$0xff]  ;;  %v713_v29 = vmov 0   ;;  %v402_v30 = vld [vmem:[#allocation3] sm:$0xff] }
 0x1aa   : > { %626 = vset.pattern.permute.xlu0 %v713_v29 }
 0x1ab   : > { %398 = vperm.xlu0 %626, %v395_v28  }
 0x1af   : > { %405 = vperm.xlu0 %626, %v402_v30  }
 0x226   : > { %v399_v31 = vpop.permute.xlu0 %398 }
 0x227   : > { %v401_v32 = vmul.f32 %v399_v31, %v344_v4 }
 0x22a   : > { %v406_v33 = vpop.permute.xlu0 %405 }
 0x22b   : > { %v408_v34 = vadd.f32 %v406_v33, %v401_v32 }
 0x22d   : > { %v409_v35 = vmax.f32 %v408_v34, 0.0 }
 0x22f   : > { %410 = vst [vmem:[#allocation7] sm:$0xff] %v409_v35 }
 0x230 PF: > { %p806_p4 = scmp.eq.s32.totalorder %s545_s18, 1  ;;  %s714_s11 = smov [#allocation7]  }
 0x231   : > { %s427_s12 = sshll.u32 %s714_s11, 4  ;;  %s428_s12 = int_to_ptr.vmem [resolvable:$true] %s427_s12 }
 0x232   : > { %s653_s13 = scalar_lea.vmem %s428_s12, 128  ;;  %s659_s14 = scalar_lea.vmem %s428_s12, 256 }
 0x233   : > { %p654_p5 = scmp.ne.s32.totalorder %s428_s12, %s653_s13  ;;  %p660_p8 = scmp.lt.s32.totalorder %s428_s12, %s428_s12 }
 0x234   : > { %p661_p9 = scmp.lt.s32.totalorder %s659_s14, %s653_s13 }
 0x235   : > { %p655_p6 = pnand %p654_p5, %p806_p4 }
 0x236   : > { %p662_p10 = por %p661_p9, %p660_p8 }
 0x237   : > { %p656_p7 = pneg %p655_p6 }
 0x239   : > { %p663_p11 = pnand %p662_p10, %p656_p7 }
 0x23b   : > { %666 = shalt.err (!%p663_p11)
}
 0x23c   : > { %578 = dma.vmem_to_hbm [thread:$0]  (%p806_p4), %s428_s12, 128, %s833_s4, [#allocation6]  }
 0x23d PF: > { %p592_p12 = scmp.ge.s32.totalorder %s707_s17, 2  ;;  %p593_p13 = scmp.eq.s32.totalorder %s546_s19, 1 }
 0x23f   : > { %p586_p0 = pnand %p593_p13, %p592_p12 }
 0x241   : > { %p587_p1 = pneg %p586_p0 }
 0x243   : > { %694 = dma.done.wait (%p587_p1), [#allocation6], 128  }
 0x244   : > { %696 = vsyncadd (%p587_p1), [#allocation6], 4294967168  ;;  %s18_s17 = sadd.s32 1, %s707_s17   ;;  %s837_s15 = smov %s703_s16 }
 0x245   : > { %p15_p2 = scmp.ge.s32.totalorder %s18_s17, 4   ;;  %s838_s16 = smov %s840_s20 }
 0x247   :  { %17 = sbr.rel (!%p15_p2) target bundleno = 4 (0x4), region = 99 }
 0x24c   :  { %445 = vsyncpa [#allocation5], 1 }
 0x24d   :  { %447 = vsyncpa [#allocation5 + $0x1], 1 }
 0x24e   :  { %448 = vsyncpa [#allocation6], 1 }
 0x24f   :  { %450 = vsyncpa [#allocation6 + $0x1], 1 }

</bundles_post_ra>
